<compile_context>
chip_gen: v5e
topology: v5e:2x2
jax: 0.10.0
libtpu: 0.0.40
codegen_flags: <defaults>
</compile_context>

<pallas_src>
import jax
import jax.numpy as jnp
from jax.experimental import pallas as pl
from jax.experimental.pallas import tpu as pltpu

LANE = 128      # TPU lane width  (fast axis of a vreg)
SUBLANE = 8     # TPU sublane width (slow axis of a vreg)

H1 = 32         # fc1 out
H2 = 64         # fc2 out

MAX_B_BLK = 1024   # batch rows per grid step (512-2048 sweet spot; keeps the
                   # double-buffered working set ~2.5 MiB, safe for v7x's
                   # 64 MiB VMEM / 32 MiB default scoped limit)


def _round_up(n: int, m: int) -> int:
    return (n + m - 1) // m * m


def _param_offsets(in_features: int):
    """Row offsets of each parameter inside the packed [rows, 128] slab."""
    in_pad = _round_up(in_features, SUBLANE)
    r_b1 = in_pad                    # b1 row (8-aligned)
    r_w2 = r_b1 + SUBLANE            # w2 occupies 128 rows (rows >= H1 are 0)
    r_b2 = r_w2 + LANE
    r_w3 = r_b2 + SUBLANE            # w3 occupies 128 rows (rows >= H2 are 0)
    r_b3 = r_w3 + LANE
    rows = r_b3 + SUBLANE
    return r_b1, r_w2, r_b2, r_w3, r_b3, rows


# ---------------------------------------------------------------------------
# Parameter packing: one contiguous [rows, 128] f32 slab, every block spans
# the full 128 lanes (unused lanes / rows are zero so they pass through the
# padded matmuls + ReLU as exact zeros).
# ---------------------------------------------------------------------------
def pack_params(p, in_features: int, out_features: int) -> jnp.ndarray:
    r_b1, r_w2, r_b2, r_w3, r_b3, rows = _param_offsets(in_features)
    buf = jnp.zeros((rows, LANE), jnp.float32)
    buf = buf.at[0:in_features, 0:H1].set(p["w1"])          # w1 [in, 32]
    buf = buf.at[r_b1, 0:H1].set(p["b1"])                   # b1 [32]
    buf = buf.at[r_w2:r_w2 + H1, 0:H2].set(p["w2"])         # w2 [32, 64]
    buf = buf.at[r_b2, 0:H2].set(p["b2"])                   # b2 [64]
    buf = buf.at[r_w3:r_w3 + H2, 0:out_features].set(p["w3"])   # w3 [64, out]
    buf = buf.at[r_b3, 0:out_features].set(p["b3"])         # b3 [out]
    return buf


def make_policy_kernel(in_features: int, out_features: int):
    """Kernel with static parameter row offsets baked in."""
    r_b1, r_w2, r_b2, r_w3, r_b3, _ = _param_offsets(in_features)

    def policy_kernel(x_ref, p_ref, loc_ref):
        x = x_ref[...]                               # [B_BLK, in_features]

        # Full-lane parameter views -> unmasked vld, clean (8,128) MXU layout.
        # (Zero-padded rows/columns contribute exact zeros everywhere.)
        w1 = p_ref[0:in_features, :]                 # [in_features, 128]
        b1 = p_ref[r_b1:r_b1 + 1, :]                 # [1, 128] (sublane bcast)
        w2 = p_ref[r_w2:r_w2 + LANE, :]              # [128, 128]
        b2 = p_ref[r_b2:r_b2 + 1, :]                 # [1, 128]
        w3 = p_ref[r_w3:r_w3 + LANE, :]              # [128, 128]
        b3 = p_ref[r_b3:r_b3 + 1, :]                 # [1, 128]

        h1 = jnp.dot(x, w1, preferred_element_type=jnp.float32)
        h1 = jnp.maximum(h1 + b1, 0.0)               # [B_BLK, 128]
        h2 = jnp.dot(h1, w2, preferred_element_type=jnp.float32)
        h2 = jnp.maximum(h2 + b2, 0.0)               # [B_BLK, 128]
        loc = jnp.dot(h2, w3, preferred_element_type=jnp.float32) + b3

        # Narrow store: write only the out_features columns that exist in the
        # logical output (block last dim == full array dim, so it is legal).
        # Cuts HBM writeback ~21x vs a padded [B,128] slab for out_features=6.
        loc_ref[...] = loc[:, :out_features].astype(loc_ref.dtype)

    return policy_kernel


def _policy_forward_impl(x, packed_params, logscale):
    """One fused forward: pallas_call + tail slice + exp/broadcast of scale."""
    B, in_features = x.shape
    out_features = logscale.shape[0]

    # Batch tile: big enough to reach HBM roofline, small enough for v7x VMEM.
    b_blk = min(MAX_B_BLK, _round_up(B, SUBLANE))
    b_pad = _round_up(B, b_blk)
    if b_pad != B:
        # Pad the batch tail so the grid divides exactly (garbage never leaks
        # into valid rows; padded rows are sliced off below).
        x = jnp.pad(x, ((0, b_pad - B), (0, 0)))

    grid = (b_pad // b_blk,)
    loc_pad = pl.pallas_call(
        make_policy_kernel(in_features, out_features),
        out_shape=jax.ShapeDtypeStruct((b_pad, out_features), jnp.float32),
        grid=grid,
        in_specs=[
            # x: tiled over batch, true feature width (no wrapper-side pad).
            pl.BlockSpec((b_blk, in_features), lambda i: (i, 0)),
            # packed params: constant index_map -> resident in VMEM, one DMA.
            pl.BlockSpec(packed_params.shape, lambda i: (0, 0)),
        ],
        out_specs=pl.BlockSpec((b_blk, out_features), lambda i: (i, 0)),
        compiler_params=pltpu.CompilerParams(
            # batch axis is embarrassingly parallel -> shard across the two
            # TensorCores on v7x; harmless (1 TC) on v5e/v6e.
            dimension_semantics=("parallel",)),
    )(x, packed_params)

    loc = loc_pad[:B]
    # scale = exp(scale_param).expand_as(loc): x-independent, fused by XLA.
    scale = jnp.broadcast_to(jnp.exp(logscale), loc.shape)
    return loc, scale


policy_forward = jax.jit(_policy_forward_impl)


def init_params(key, in_features: int, out_features: int):
    """Deterministic parameter init (shapes match the nn.Linear layers)."""
    ks = jax.random.split(key, 6)
    s = 0.1
    # weights stored already transposed to [in, out] (PyTorch keeps [out, in])
    w1 = s * jax.random.normal(ks[0], (in_features, H1), jnp.float32)
    b1 = s * jax.random.normal(ks[1], (H1,), jnp.float32)
    w2 = s * jax.random.normal(ks[2], (H1, H2), jnp.float32)
    b2 = s * jax.random.normal(ks[3], (H2,), jnp.float32)
    w3 = s * jax.random.normal(ks[4], (H2, out_features), jnp.float32)
    b3 = s * jax.random.normal(ks[5], (out_features,), jnp.float32)
    # torch.nn.init.constant_(self.scale, -0.5)
    logscale = jnp.full((out_features,), -0.5, jnp.float32)
    # TODO(synk): self.critic is defined in Policy.__init__ but unused in
    # forward(); it is intentionally not part of this kernel.
    return dict(w1=w1, b1=b1, w2=w2, b2=b2, w3=w3, b3=b3, logscale=logscale)


def policy_forward_ref(x, p):
    """Pure-JAX reference for correctness check."""
    h1 = jnp.maximum(x @ p["w1"] + p["b1"], 0.0)
    h2 = jnp.maximum(h1 @ p["w2"] + p["b2"], 0.0)
    loc = h2 @ p["w3"] + p["b3"]
    scale = jnp.broadcast_to(jnp.exp(p["logscale"]), loc.shape)
    return loc, scale


if __name__ == "__main__":
    key = jax.random.PRNGKey(0)
    k_x, k_x2, k_p = jax.random.split(key, 3)

    in_features = 24     # e.g. DMControl observation size
    out_features = 6     # e.g. action dimension

    params = init_params(k_p, in_features, out_features)
    packed = pack_params(params, in_features, out_features)

    # --- small-shape check (B=2, the module's typical act() usage) ----------
    batch = 2
    x = jax.random.normal(k_x, (batch, in_features), jnp.float32)
    loc, scale = policy_forward(x, packed, params["logscale"])
    jax.block_until_ready((loc, scale))

    loc_ref, scale_ref = policy_forward_ref(x, params)
    assert loc.shape == (batch, out_features)
    assert scale.shape == (batch, out_features)
    assert jnp.allclose(loc, loc_ref, atol=1e-5, rtol=1e-5)
    assert jnp.allclose(scale, scale_ref, atol=1e-6, rtol=1e-6)

    # --- larger batch: exercises the batch grid, resident params and the ----
    # --- non-divisible tail (B=2500 -> b_blk=1024, grid=3, 572 padded rows) --
    batch2 = 2500
    x2 = jax.random.normal(k_x2, (batch2, in_features), jnp.float32)
    loc2, scale2 = policy_forward(x2, packed, params["logscale"])
    jax.block_until_ready((loc2, scale2))
    loc2_ref, scale2_ref = policy_forward_ref(x2, params)
    assert loc2.shape == (batch2, out_features)
    assert jnp.allclose(loc2, loc2_ref, atol=1e-5, rtol=1e-5)
    assert jnp.allclose(scale2, scale2_ref, atol=1e-6, rtol=1e-6)

    print("KERNEL_OK")
</pallas_src>

<mosaic_0001>
module attributes {stable_mosaic.version = 11 : i64} {
  func.func @policy_kernel(%arg0: i32, %arg1: memref<8x24xf32, #tpu.memory_space<vmem>>, %arg2: memref<304x128xf32, #tpu.memory_space<vmem>>, %arg3: memref<8x6xf32, #tpu.memory_space<vmem>>) attributes {dimension_semantics = [#tpu.dimension_semantics<parallel>], iteration_bounds = array<i64: 1>, scalar_prefetch = 0 : i64, scratch_operands = 0 : i64, tpu.core_type = #tpu.core_type<tc>, window_params = [{transform_indices = @transform_0, window_bounds = array<i64: 8, 24>}, {pipeline_mode = #tpu.pipeline_mode<synchronous>, transform_indices = @transform_1, window_bounds = array<i64: 304, 128>}, {transform_indices = @transform_2, window_bounds = array<i64: 8, 6>}]} {
    %c0 = arith.constant 0 : index
    %c0_0 = arith.constant 0 : index
    %0 = vector.load %arg1[%c0, %c0_0] : memref<8x24xf32, #tpu.memory_space<vmem>>, vector<8x24xf32>
    %c0_1 = arith.constant 0 : index
    %c0_2 = arith.constant 0 : index
    %1 = vector.load %arg2[%c0_1, %c0_2] : memref<304x128xf32, #tpu.memory_space<vmem>>, vector<24x128xf32>
    %c24 = arith.constant 24 : index
    %c0_3 = arith.constant 0 : index
    %2 = vector.load %arg2[%c24, %c0_3] : memref<304x128xf32, #tpu.memory_space<vmem>>, vector<1x128xf32>
    %c32 = arith.constant 32 : index
    %c0_4 = arith.constant 0 : index
    %3 = vector.load %arg2[%c32, %c0_4] : memref<304x128xf32, #tpu.memory_space<vmem>>, vector<128x128xf32>
    %c160 = arith.constant 160 : index
    %c0_5 = arith.constant 0 : index
    %4 = vector.load %arg2[%c160, %c0_5] : memref<304x128xf32, #tpu.memory_space<vmem>>, vector<1x128xf32>
    %c168 = arith.constant 168 : index
    %c0_6 = arith.constant 0 : index
    %5 = vector.load %arg2[%c168, %c0_6] : memref<304x128xf32, #tpu.memory_space<vmem>>, vector<128x128xf32>
    %c296 = arith.constant 296 : index
    %c0_7 = arith.constant 0 : index
    %6 = vector.load %arg2[%c296, %c0_7] : memref<304x128xf32, #tpu.memory_space<vmem>>, vector<1x128xf32>
    %cst = arith.constant dense<0.000000e+00> : vector<8x128xf32>
    %7 = tpu.matmul %0, %1, %cst {dimension_numbers = #tpu.dot_dimension_numbers<[1], [0], [0], [1], [0, 0, 1, 1], [], []>} : vector<8x24xf32>, vector<24x128xf32>, vector<8x128xf32> -> vector<8x128xf32>
    %8 = vector.broadcast %2 : vector<1x128xf32> to vector<8x128xf32>
    %9 = arith.addf %7, %8 : vector<8x128xf32>
    %cst_8 = arith.constant 0.000000e+00 : f32
    %10 = vector.broadcast %cst_8 : f32 to vector<8x128xf32>
    %11 = arith.maximumf %9, %10 : vector<8x128xf32>
    %cst_9 = arith.constant dense<0.000000e+00> : vector<8x128xf32>
    %12 = tpu.matmul %11, %3, %cst_9 {dimension_numbers = #tpu.dot_dimension_numbers<[1], [0], [0], [1], [0, 0, 1, 1], [], []>} : vector<8x128xf32>, vector<128x128xf32>, vector<8x128xf32> -> vector<8x128xf32>
    %13 = vector.broadcast %4 : vector<1x128xf32> to vector<8x128xf32>
    %14 = arith.addf %12, %13 : vector<8x128xf32>
    %cst_10 = arith.constant 0.000000e+00 : f32
    %15 = vector.broadcast %cst_10 : f32 to vector<8x128xf32>
    %16 = arith.maximumf %14, %15 : vector<8x128xf32>
    %cst_11 = arith.constant dense<0.000000e+00> : vector<8x128xf32>
    %17 = tpu.matmul %16, %5, %cst_11 {dimension_numbers = #tpu.dot_dimension_numbers<[1], [0], [0], [1], [0, 0, 1, 1], [], []>} : vector<8x128xf32>, vector<128x128xf32>, vector<8x128xf32> -> vector<8x128xf32>
    %18 = vector.broadcast %6 : vector<1x128xf32> to vector<8x128xf32>
    %19 = arith.addf %17, %18 : vector<8x128xf32>
    %20 = vector.extract_strided_slice %19 {offsets = [0, 0], sizes = [8, 6], strides = [1, 1]} : vector<8x128xf32> to vector<8x6xf32>
    %c0_12 = arith.constant 0 : index
    %c0_13 = arith.constant 0 : index
    %21 = vector.load %arg3[%c0_12, %c0_13] : memref<8x6xf32, #tpu.memory_space<vmem>>, vector<8x6xf32>
    tpu.vector_store %arg3[%c0_12, %c0_13], %20 {strides = array<i32>} : memref<8x6xf32, #tpu.memory_space<vmem>>, vector<8x6xf32>,
    return
  }
  func.func @transform_0(%arg0: i32) -> (i32, i32) {
    %c0_i32 = arith.constant 0 : i32
    %c0_i32_0 = arith.constant 0 : i32
    return %arg0, %c0_i32 : i32, i32
  }
  func.func @transform_1(%arg0: i32) -> (i32, i32) {
    %c0_i32 = arith.constant 0 : i32
    %c0_i32_0 = arith.constant 0 : i32
    %c0_i32_1 = arith.constant 0 : i32
    return %c0_i32, %c0_i32_0 : i32, i32
  }
  func.func @transform_2(%arg0: i32) -> (i32, i32) {
    %c0_i32 = arith.constant 0 : i32
    %c0_i32_0 = arith.constant 0 : i32
    return %arg0, %c0_i32 : i32, i32
  }
}

</mosaic_0001>

<bundles_post_ra>
// kernel: _policy_forward_impl.1
= control target key start
LH: loop header
LB: loop body
LE: loop exit
PB: predicated region body
PF: predicated region fallthrough
CT: control target
= control target key end

     0   :  { %7 = vsyncpa [#allocation3], 0  ;;  %s175_s12 = smov [#allocation2]   ;;  %s176_s14 = smov 128   ;;  %s202_s0 = inlined_call_operand.vmem [shape: f32[8,24], index: 0, kind: input, shape index: {}]   ;;  %s203_s1 = inlined_call_operand.hbm [shape: f32[304,128], index: 1, kind: input, shape index: {}]   ;;  %s204_s2 = inlined_call_operand.vmem [shape: f32[8,6], index: 2, kind: output, shape index: {}]  }
   0x1   :  { %s14_s11 = sshll.u32 %s203_s1, 4  ;;  %s16_s13 = sshll.u32 %s175_s12, 4  ;;  %s15_s11 = int_to_ptr.hbm [resolvable:$true] %s14_s11  ;;  %s17_s13 = int_to_ptr.vmem [resolvable:$true] %s16_s13 }
   0x2   :  { %s177_s15 = smov 8  }
   0x3   :  { %22 = dma.hbm_to_vmem [thread:$0]  %s15_s11, 4864, %s17_s13, [#allocation3], %s176_s14, %s176_s14, %s177_s15  }
   0x4   :  { %173 = dma.done.wait [#allocation3], 4864  }
   0x5   :  { %174 = vsyncadd [#allocation3], 4294962432  ;;  %v30_v0 = vld [vmem:[#allocation2 + $0x10] sm:$0xff]  ;;  %v29_v1 = vld [vmem:[#allocation2 + $0x8] sm:$0xff]  ;;  %vm67_vm0 = vcmask 195584   ;;  %vm135_vm1 = vcmask 48128  }
   0x6   :  { %84 = vmatpush.msra.mxu0 %v30_v0  ;;  %v47_v2 = vld [vmem:[#allocation2 + $0x98] sm:$0xff]  ;;  %v46_v3 = vld [vmem:[#allocation2 + $0x90] sm:$0xff]  ;;  %v28_v4 = vld [vmem:[#allocation2] sm:$0xff] }
   0x7   :  { %93 = vmatpush.msra.mxu1 %v47_v2  ;;  %v27_v5 = vld [vmem:[%s202_s0] sm:$0xff]  ;;  %v45_v6 = vld [vmem:[#allocation2 + $0x88] sm:$0xff]  ;;  %v43_v8 = vld [vmem:[#allocation2 + $0x78] sm:$0xff] }
   0x8   :  { %85 = vmatpush.msra.mxu0 %v29_v1  ;;  %v44_v7 = vld [vmem:[#allocation2 + $0x80] sm:$0xff]  ;;  %v42_v9 = vld [vmem:[#allocation2 + $0x70] sm:$0xff]  ;;  %v41_v10 = vld [vmem:[#allocation2 + $0x68] sm:$0xff] }
   0x9   :  { %94 = vmatpush.msra.mxu1 %v46_v3  ;;  %v40_v11 = vld [vmem:[#allocation2 + $0x60] sm:$0xff]  ;;  %v39_v12 = vld [vmem:[#allocation2 + $0x58] sm:$0xff]  ;;  %v38_v13 = vld [vmem:[#allocation2 + $0x50] sm:$0xff] }
   0xa   :  { %86 = vmatpush.msra.mxu0 %v28_v4  ;;  %v37_v14 = vld [vmem:[#allocation2 + $0x48] sm:$0xff]  ;;  %v36_v15 = vld [vmem:[#allocation2 + $0x40] sm:$0xff]  ;;  %v35_v16 = vld [vmem:[#allocation2 + $0x38] sm:$0xff] }
   0xb   :  { %142 = vmatmul.msk.f32.vlgmr.msra.gmra.mxu0 %vm67_vm0, %v27_v5  ;;  %95 = vmatpush.msra.mxu1 %v45_v6  ;;  %v34_v17 = vld [vmem:[#allocation2 + $0x30] sm:$0xff]  ;;  %v33_v18 = vld [vmem:[#allocation2 + $0x28] sm:$0xff]  ;;  %v32_v19 = vld [vmem:[#allocation2 + $0x20] sm:$0xff] }
   0xc   :  { %v64_v20 = vld [vmem:[#allocation2 + $0x120] sm:$0xff]  ;;  %v63_v21 = vld [vmem:[#allocation2 + $0x118] sm:$0xff]  ;;  %v62_v22 = vld [vmem:[#allocation2 + $0x110] sm:$0xff] }
   0xd   :  { %96 = vmatpush.msra.mxu1 %v44_v7  ;;  %115 = vmatpush.msra.mxu2 %v64_v20  ;;  %v61_v23 = vld [vmem:[#allocation2 + $0x108] sm:$0xff]  ;;  %v60_v24 = vld [vmem:[#allocation2 + $0x100] sm:$0xff]  ;;  %v59_v25 = vld [vmem:[#allocation2 + $0xf8] sm:$0xff] }
   0xe   :  { %v58_v26 = vld [vmem:[#allocation2 + $0xf0] sm:$0xff]  ;;  %v57_v27 = vld [vmem:[#allocation2 + $0xe8] sm:$0xff]  ;;  %v56_v28 = vld [vmem:[#allocation2 + $0xe0] sm:$0xff] }
   0xf   :  { %97 = vmatpush.msra.mxu1 %v43_v8  ;;  %116 = vmatpush.msra.mxu2 %v63_v21  ;;  %v55_v29 = vld [vmem:[#allocation2 + $0xd8] sm:$0xff]  ;;  %v54_v30 = vld [vmem:[#allocation2 + $0xd0] sm:$0xff]  ;;  %v53_v31 = vld [vmem:[#allocation2 + $0xc8] sm:$0xff] }
  0x10   :  { %v52_v32 = vld [vmem:[#allocation2 + $0xc0] sm:$0xff]  ;;  %v146_v33 = vld [vmem:[#allocation2 + $0x18] ss:$0 sm:$0xff]  ;;  %v50_v38 = vld [vmem:[#allocation2 + $0xb0] sm:$0xff] }
  0x11   :  { %98 = vmatpush.msra.mxu1 %v42_v9  ;;  %117 = vmatpush.msra.mxu2 %v62_v22  ;;  %v51_v37 = vld [vmem:[#allocation2 + $0xb8] sm:$0xff]  ;;  %v49_v39 = vld [vmem:[#allocation2 + $0xa8] sm:$0xff]  ;;  %v147_v40 = vld [vmem:[#allocation2 + $0xa0] ss:$0 sm:$0xff] }
  0x12   :  { %v148_v44 = vld [vmem:[#allocation2 + $0x128] ss:$0 sm:$0xff] }
  0x13   :  { %99 = vmatpush.msra.mxu1 %v41_v10  ;;  %118 = vmatpush.msra.mxu2 %v61_v23 }
  0x15   :  { %100 = vmatpush.msra.mxu1 %v40_v11  ;;  %119 = vmatpush.msra.mxu2 %v60_v24 }
  0x17   :  { %101 = vmatpush.msra.mxu1 %v39_v12  ;;  %120 = vmatpush.msra.mxu2 %v59_v25 }
  0x19   :  { %102 = vmatpush.msra.mxu1 %v38_v13  ;;  %121 = vmatpush.msra.mxu2 %v58_v26 }
  0x1b   :  { %103 = vmatpush.msra.mxu1 %v37_v14  ;;  %122 = vmatpush.msra.mxu2 %v57_v27 }
  0x1d   :  { %104 = vmatpush.msra.mxu1 %v36_v15  ;;  %123 = vmatpush.msra.mxu2 %v56_v28 }
  0x1f   :  { %105 = vmatpush.msra.mxu1 %v35_v16  ;;  %124 = vmatpush.msra.mxu2 %v55_v29 }
  0x21   :  { %106 = vmatpush.msra.mxu1 %v34_v17  ;;  %125 = vmatpush.msra.mxu2 %v54_v30 }
  0x23   :  { %107 = vmatpush.msra.mxu1 %v33_v18  ;;  %126 = vmatpush.msra.mxu2 %v53_v31 }
  0x25   :  { %108 = vmatpush.msra.mxu1 %v32_v19  ;;  %127 = vmatpush.msra.mxu2 %v52_v32 }
  0x27   :  { %128 = vmatpush.msra.mxu2 %v51_v37 }
  0x29   :  { %129 = vmatpush.msra.mxu2 %v50_v38 }
  0x2b   :  { %130 = vmatpush.msra.mxu2 %v49_v39 }
  0x88   :  { %v88_v34 = vpop.f32.mrf.mxu0 }
  0x89   :  { %v89_v35 = vadd.f32 %v146_v33, %v88_v34 }
  0x8b   :  { %v91_v36 = vmax.f32 %v89_v35, 0.0 }
  0x8d   :  { %109 = vmatmul.f32.vlgmr.msra.gmra.mxu1 %v91_v36 }
 0x10a   :  { %v110_v41 = vpop.f32.mrf.mxu1 }
 0x10b   :  { %v111_v42 = vadd.f32 %v147_v40, %v110_v41 }
 0x10d   :  { %v113_v43 = vmax.f32 %v111_v42, 0.0 }
 0x10f   :  { %131 = vmatmul.f32.vlgmr.msra.gmra.mxu2 %v113_v43 }
 0x192   :  { %v132_v45 = vpop.f32.mrf.mxu2 }
 0x193   :  { %v133_v46 = vadd.f32 %v148_v44, %v132_v45 }
 0x195   :  { %136 = vst.msk [vmem:[%s204_s2] sm:$0xff] %vm135_vm1, %v133_v46 }
 0x196   :  { %141 = vsyncpa [#allocation3], 1 }

</bundles_post_ra>
